<compile_context>
chip_gen: v5e
topology: v5e:2x2
jax: 0.10.0
libtpu: 0.0.40
codegen_flags: <defaults>
</compile_context>

<pallas_src>
import functools
import math

import jax
import jax.numpy as jnp
from jax import lax
from jax.experimental import pallas as pl
from jax.experimental.pallas import tpu as pltpu

ACT_DTYPE = jnp.bfloat16          # MXU operand / inter-kernel activation dtype
NEG_INF = -1e30                   # finite "minus infinity" (avoids inf-inf NaNs in online softmax)
VMEM_LIMIT = 32 * 1024 * 1024     # safe on v5e/v6e/v7x; tiles below leave double-buffer headroom


def _tile(dim, prefs):
    """Pick the largest preferred tile that divides `dim`, else the full extent."""
    for p in prefs:
        if dim >= p and dim % p == 0:
            return p
    return dim


# ------------- fused RMSNorm + QKV projection + RoPE (+ 1/sqrt(Hd) folded into Q) -------------

def _norm_qkv_rope_kernel(x_ref, wn_ref, wq_ref, wk_ref, wv_ref, cos_ref, sin_ref, p_ref,
                          q_ref, k_ref, v_ref, xn_scr, *, eps, q_scale):
    # Recompute the norm only when the row-tile changes (column-tile index == 0).
    @pl.when(pl.program_id(1) == 0)
    def _():
        x = x_ref[...].astype(jnp.float32)
        ms = jnp.mean(x * x, axis=-1, keepdims=True)
        xn = x * lax.rsqrt(ms + eps) * wn_ref[...].astype(jnp.float32)
        xn_scr[...] = xn.astype(xn_scr.dtype)

    xn = xn_scr[...]
    cos = cos_ref[...]                                    # (tm, tn) f32, head-tiled cos
    sin = sin_ref[...]                                    # (tm, tn) f32, head-tiled sin
    p = p_ref[...]                                        # (tn, tn) bf16 block-diag pair-swap

    def rope(t):
        # Interleaved RoPE:  rot(t) = t*cos + (t @ P)*sin,  P = blockdiag([[0,1],[-1,0]]).
        # TODO(synk): a pltpu.roll-based pair-swap (XLU) would remove even this small MXU cost.
        swapped = jnp.dot(t.astype(ACT_DTYPE), p, preferred_element_type=jnp.float32)
        return t * cos + swapped * sin

    q = jnp.dot(xn, wq_ref[...], preferred_element_type=jnp.float32)
    k = jnp.dot(xn, wk_ref[...], preferred_element_type=jnp.float32)
    v = jnp.dot(xn, wv_ref[...], preferred_element_type=jnp.float32)
    q_ref[...] = (rope(q) * q_scale).astype(q_ref.dtype)  # softmax scale pre-folded into Q
    k_ref[...] = rope(k).astype(k_ref.dtype)
    v_ref[...] = v.astype(v_ref.dtype)


def fused_norm_qkv_rope(x2d, norm_w, wq, wk, wv, cos_rep, sin_rep, *,
                        seq_len, eps, q_scale, tm=None, tn=None):
    M, D = x2d.shape
    N = wq.shape[1]
    tm = tm or _tile(seq_len, (256, 128, 64, 32, 16, 8))
    tn = tn or _tile(N, (512, 256, 128))
    assert seq_len % tm == 0 and M % tm == 0 and N % tn == 0 and tn % 2 == 0
    s_tiles = seq_len // tm                               # row-tiles never straddle batches
    wn2d = norm_w.reshape(1, D).astype(jnp.float32)
    pair = jnp.array([[0.0, 1.0], [-1.0, 0.0]], jnp.float32)
    p_tile = jnp.kron(jnp.eye(tn // 2, dtype=jnp.float32), pair).astype(ACT_DTYPE)  # (tn, tn)
    out_sds = jax.ShapeDtypeStruct((M, N), ACT_DTYPE)
    q, k, v = pl.pallas_call(
        functools.partial(_norm_qkv_rope_kernel, eps=eps, q_scale=q_scale),
        grid=(M // tm, N // tn),
        in_specs=[
            pl.BlockSpec((tm, D), lambda i, j: (i, 0)),
            pl.BlockSpec((1, D), lambda i, j: (0, 0)),
            pl.BlockSpec((D, tn), lambda i, j: (0, j)),
            pl.BlockSpec((D, tn), lambda i, j: (0, j)),
            pl.BlockSpec((D, tn), lambda i, j: (0, j)),
            pl.BlockSpec((tm, tn), lambda i, j: (i % s_tiles, j)),
            pl.BlockSpec((tm, tn), lambda i, j: (i % s_tiles, j)),
            pl.BlockSpec((tn, tn), lambda i, j: (0, 0)),
        ],
        out_specs=[
            pl.BlockSpec((tm, tn), lambda i, j: (i, j)),
            pl.BlockSpec((tm, tn), lambda i, j: (i, j)),
            pl.BlockSpec((tm, tn), lambda i, j: (i, j)),
        ],
        out_shape=[out_sds, out_sds, out_sds],
        scratch_shapes=[pltpu.VMEM((tm, D), x2d.dtype)],
        compiler_params=pltpu.CompilerParams(
            dimension_semantics=("parallel", "arbitrary"),
            vmem_limit_bytes=VMEM_LIMIT),
    )(x2d, wn2d, wq, wk, wv, cos_rep, sin_rep, p_tile)
    return q, k, v


# ----------------------- flash attention (causal mask fused, pre-rotated Q/K) -----------------------

def _flash_attn_kernel(q_ref, k_ref, v_ref, o_ref, m_scr, l_scr, acc_scr,
                       *, num_heads, head_dim):
    tq = q_ref.shape[1]
    tkv = k_ref.shape[1]
    qi = pl.program_id(1)
    ki = pl.program_id(2)

    @pl.when(ki == 0)
    def _():
        m_scr[...] = jnp.full_like(m_scr, NEG_INF)
        l_scr[...] = jnp.zeros_like(l_scr)
        acc_scr[...] = jnp.zeros_like(acc_scr)

    # Skip KV tiles that lie entirely above the causal diagonal for this Q tile.
    @pl.when(ki * tkv < (qi + 1) * tq)
    def _():
        q_pos = qi * tq + lax.broadcasted_iota(jnp.int32, (tq, tkv), 0)
        k_pos = ki * tkv + lax.broadcasted_iota(jnp.int32, (tq, tkv), 1)
        allowed = q_pos >= k_pos

        for h in range(num_heads):
            sl = slice(h * head_dim, (h + 1) * head_dim)
            q_h = q_ref[0, :, sl]                          # (tq, Hd) bf16, RoPE + scale applied
            k_h = k_ref[0, :, sl]                          # (tkv, Hd) bf16, RoPE applied
            v_h = v_ref[0, :, sl]                          # (tkv, Hd) bf16

            s = lax.dot_general(q_h, k_h, (((1,), (1,)), ((), ())),
                                preferred_element_type=jnp.float32)   # (tq, tkv) f32
            s = jnp.where(allowed, s, NEG_INF)

            m_prev = m_scr[h]                              # (tq, 1)
            m_new = jnp.maximum(m_prev, jnp.max(s, axis=-1, keepdims=True))
            alpha = jnp.exp(m_prev - m_new)
            p = jnp.exp(s - m_new)                         # (tq, tkv)
            l_scr[h] = alpha * l_scr[h] + jnp.sum(p, axis=-1, keepdims=True)
            acc_scr[h] = alpha * acc_scr[h] + jnp.dot(
                p.astype(v_h.dtype), v_h, preferred_element_type=jnp.float32)
            m_scr[h] = m_new

    @pl.when(ki == pl.num_programs(2) - 1)
    def _():
        outs = []
        for h in range(num_heads):
            inv_l = pl.reciprocal(l_scr[h], approx=True)
            outs.append(acc_scr[h] * inv_l)
        o_ref[0] = jnp.concatenate(outs, axis=-1).astype(o_ref.dtype)


def flash_attention(q, k, v, *, num_heads, tq=None, tkv=None):
    B, S, D = q.shape
    Hd = D // num_heads
    tq = tq or _tile(S, (256, 128, 64, 32, 16, 8))
    tkv = tkv or _tile(S, (256, 128, 64, 32, 16, 8))
    assert S % tq == 0 and S % tkv == 0
    kernel = functools.partial(_flash_attn_kernel, num_heads=num_heads, head_dim=Hd)
    # TODO(synk): arbitrary user-supplied additive masks are not plumbed through; the kernel
    # generates the standard causal mask in-register (matches the module's typical usage).
    return pl.pallas_call(
        kernel,
        grid=(B, S // tq, S // tkv),
        in_specs=[
            pl.BlockSpec((1, tq, D), lambda b, qi, ki: (b, qi, 0)),
            pl.BlockSpec((1, tkv, D), lambda b, qi, ki: (b, ki, 0)),
            pl.BlockSpec((1, tkv, D), lambda b, qi, ki: (b, ki, 0)),
        ],
        out_specs=pl.BlockSpec((1, tq, D), lambda b, qi, ki: (b, qi, 0)),
        out_shape=jax.ShapeDtypeStruct((B, S, D), q.dtype),
        scratch_shapes=[
            pltpu.VMEM((num_heads, tq, 1), jnp.float32),   # running max
            pltpu.VMEM((num_heads, tq, 1), jnp.float32),   # running denom
            pltpu.VMEM((num_heads, tq, Hd), jnp.float32),  # output accumulator
        ],
        compiler_params=pltpu.CompilerParams(
            dimension_semantics=("parallel", "parallel", "arbitrary"),
            vmem_limit_bytes=VMEM_LIMIT),
    )(q, k, v)


# ----------------------- tiled matmul with fused residual add -----------------------

def _matmul_residual_kernel(a_ref, b_ref, r_ref, o_ref, acc_ref):
    @pl.when(pl.program_id(2) == 0)
    def _():
        acc_ref[...] = jnp.zeros_like(acc_ref)

    acc_ref[...] += jnp.dot(a_ref[...], b_ref[...], preferred_element_type=jnp.float32)

    @pl.when(pl.program_id(2) == pl.num_programs(2) - 1)
    def _():
        o_ref[...] = (acc_ref[...] + r_ref[...].astype(jnp.float32)).astype(o_ref.dtype)


def fused_matmul_residual(a, b, resid, *, out_dtype=None, tm=None, tn=None, tk=None):
    M, K = a.shape
    K2, N = b.shape
    assert K == K2 and resid.shape == (M, N)
    out_dtype = out_dtype or a.dtype
    tm = tm or _tile(M, (256, 128, 64, 32, 16, 8))
    tn = tn or _tile(N, (512, 256, 128))
    tk = tk or _tile(K, (512, 256, 128))
    assert M % tm == 0 and N % tn == 0 and K % tk == 0
    return pl.pallas_call(
        _matmul_residual_kernel,
        grid=(M // tm, N // tn, K // tk),
        in_specs=[
            pl.BlockSpec((tm, tk), lambda i, j, k: (i, k)),
            pl.BlockSpec((tk, tn), lambda i, j, k: (k, j)),
            pl.BlockSpec((tm, tn), lambda i, j, k: (i, j)),
        ],
        out_specs=pl.BlockSpec((tm, tn), lambda i, j, k: (i, j)),
        out_shape=jax.ShapeDtypeStruct((M, N), out_dtype),
        scratch_shapes=[pltpu.VMEM((tm, tn), jnp.float32)],
        compiler_params=pltpu.CompilerParams(
            dimension_semantics=("parallel", "parallel", "arbitrary"),
            vmem_limit_bytes=VMEM_LIMIT),
    )(a, b, resid)


# ----------------------- fused RMSNorm + SwiGLU FFN + residual -----------------------

def _norm_ffn_kernel(x_ref, wn_ref, w1_ref, w3_ref, w2_ref, o_ref, xn_scr, acc_scr, *, eps):
    t = pl.program_id(1)

    @pl.when(t == 0)
    def _():
        x = x_ref[...].astype(jnp.float32)
        ms = jnp.mean(x * x, axis=-1, keepdims=True)
        xn = x * lax.rsqrt(ms + eps) * wn_ref[...].astype(jnp.float32)
        xn_scr[...] = xn.astype(xn_scr.dtype)
        acc_scr[...] = jnp.zeros_like(acc_scr)

    xn = xn_scr[...]
    h1 = jnp.dot(xn, w1_ref[...], preferred_element_type=jnp.float32)
    h3 = jnp.dot(xn, w3_ref[...], preferred_element_type=jnp.float32)
    g = (h1 * jax.nn.sigmoid(h1)) * h3                     # SiLU(x@w1) * (x@w3)
    acc_scr[...] += jnp.dot(g.astype(w2_ref.dtype), w2_ref[...],
                            preferred_element_type=jnp.float32)

    @pl.when(t == pl.num_programs(1) - 1)
    def _():
        o_ref[...] = (acc_scr[...] + x_ref[...].astype(jnp.float32)).astype(o_ref.dtype)


def fused_norm_ffn_residual(x2d, norm_w, w1, w3, w2, *, eps, out_dtype=None, tm=None, th=None):
    M, D = x2d.shape
    Hid = w1.shape[1]
    out_dtype = out_dtype or x2d.dtype
    tm = tm or _tile(M, (256, 128, 64, 32, 16, 8))
    th = th or _tile(Hid, (512, 256, 128))
    assert M % tm == 0 and Hid % th == 0
    wn2d = norm_w.reshape(1, D).astype(jnp.float32)
    return pl.pallas_call(
        functools.partial(_norm_ffn_kernel, eps=eps),
        grid=(M // tm, Hid // th),
        in_specs=[
            pl.BlockSpec((tm, D), lambda i, t: (i, 0)),
            pl.BlockSpec((1, D), lambda i, t: (0, 0)),
            pl.BlockSpec((D, th), lambda i, t: (0, t)),
            pl.BlockSpec((D, th), lambda i, t: (0, t)),
            pl.BlockSpec((th, D), lambda i, t: (t, 0)),
        ],
        out_specs=pl.BlockSpec((tm, D), lambda i, t: (i, 0)),
        out_shape=jax.ShapeDtypeStruct((M, D), out_dtype),
        scratch_shapes=[pltpu.VMEM((tm, D), x2d.dtype),
                        pltpu.VMEM((tm, D), jnp.float32)],
        compiler_params=pltpu.CompilerParams(
            dimension_semantics=("parallel", "arbitrary"),
            vmem_limit_bytes=VMEM_LIMIT),
    )(x2d, wn2d, w1, w3, w2)


# ----------------------- RoPE tables + full block wrapper -----------------------

def precompute_rope(head_dim, max_seq, theta=10000.0):
    freqs = 1.0 / (theta ** (jnp.arange(0, head_dim, 2, dtype=jnp.float32) / head_dim))
    t = jnp.arange(max_seq, dtype=jnp.float32)
    ang = jnp.outer(t, freqs)                              # (max_seq, Hd//2)
    cos_half, sin_half = jnp.cos(ang), jnp.sin(ang)
    cos_full = jnp.repeat(cos_half, 2, axis=-1)            # (max_seq, Hd): c0,c0,c1,c1,...
    sin_full = jnp.repeat(sin_half, 2, axis=-1)
    return {"cos_full": cos_full, "sin_full": sin_full,
            "cos_half": cos_half, "sin_half": sin_half}


def transformer_block(x, params, rope, num_heads, norm_eps=1e-5, start_p=0, *,
                      tm=None, tn=None, tk=None, th=None, tq=None, tkv=None):
    B, S, D = x.shape
    Hd = D // num_heads
    scale = 1.0 / math.sqrt(Hd)
    out_dtype = x.dtype
    x2d = x.reshape(B * S, D).astype(ACT_DTYPE)

    # Head-tiled RoPE tables (S, D): same cos/sin pattern replicated for every head.
    cos_rep = jnp.tile(rope["cos_full"][start_p:start_p + S], (1, num_heads))
    sin_rep = jnp.tile(rope["sin_full"][start_p:start_p + S], (1, num_heads))

    # Attention branch: RMSNorm + QKV projection + RoPE + q-scaling fused into one kernel.
    q2d, k2d, v2d = fused_norm_qkv_rope(
        x2d, params["attn_norm_w"], params["wq_t"], params["wk_t"], params["wv_t"],
        cos_rep, sin_rep, seq_len=S, eps=norm_eps, q_scale=scale, tm=tm, tn=tn)
    q3 = q2d.reshape(B, S, D)
    k3 = k2d.reshape(B, S, D)
    v3 = v2d.reshape(B, S, D)

    attn = flash_attention(q3, k3, v3, num_heads=num_heads, tq=tq, tkv=tkv)

    # Output projection with fused residual add (h = x + attn @ wo).
    h2d = fused_matmul_residual(attn.reshape(B * S, D), params["wo_t"], x2d,
                                out_dtype=ACT_DTYPE, tm=tm, tn=tn, tk=tk)

    # FFN branch: RMSNorm + SwiGLU + residual fused, output matches input dtype.
    out2d = fused_norm_ffn_residual(h2d, params["ffn_norm_w"],
                                    params["w1_t"], params["w3_t"], params["w2_t"],
                                    eps=norm_eps, out_dtype=out_dtype, tm=tm, th=th)
    return out2d.reshape(B, S, D)


# ----------------------- pure-JAX f32 reference (sanity check) -----------------------

def apply_rotary_emb_ref(xq, xk, cos, sin):
    def rot(x):
        xr = x.astype(jnp.float32).reshape(*x.shape[:-1], -1, 2)
        xre, xim = xr[..., 0], xr[..., 1]
        c = cos[None, :, None, :]
        s = sin[None, :, None, :]
        return jnp.stack([xre * c - xim * s, xre * s + xim * c], axis=-1).reshape(x.shape)
    return rot(xq), rot(xk)


def reference_block(x, params, cos_half, sin_half, mask, num_heads, norm_eps=1e-5):
    B, S, D = x.shape
    Hd = D // num_heads

    def rms(y, w):
        ms = jnp.mean(y * y, axis=-1, keepdims=True)
        return y * lax.rsqrt(ms + norm_eps) * w

    xn = rms(x, params["attn_norm_w"])
    xq = (xn @ params["wq_t"]).reshape(B, S, num_heads, Hd)
    xk = (xn @ params["wk_t"]).reshape(B, S, num_heads, Hd)
    xv = (xn @ params["wv_t"]).reshape(B, S, num_heads, Hd)
    xq, xk = apply_rotary_emb_ref(xq, xk, cos_half, sin_half)
    q = jnp.transpose(xq, (0, 2, 1, 3))
    k = jnp.transpose(xk, (0, 2, 1, 3))
    v = jnp.transpose(xv, (0, 2, 1, 3))
    s = jnp.einsum('bhqd,bhkd->bhqk', q, k) / math.sqrt(Hd) + mask[None, None]
    p = jax.nn.softmax(s, axis=-1)
    o = jnp.einsum('bhqk,bhkd->bhqd', p, v)
    o = jnp.transpose(o, (0, 2, 1, 3)).reshape(B, S, D)
    h = x + o @ params["wo_t"]
    hn = rms(h, params["ffn_norm_w"])
    h1 = hn @ params["w1_t"]
    h3 = hn @ params["w3_t"]
    return h + ((h1 * jax.nn.sigmoid(h1)) * h3) @ params["w2_t"]


# ----------------------- main -----------------------

if __name__ == "__main__":
    B, S, D, H = 2, 16, 256, 4
    Hd = D // H
    MAX_SEQ = 32
    norm_eps = 1e-5

    # FeedForward hidden dim, same arithmetic as the PyTorch module:
    multiple_of = 256
    hidden = int(2 * (4 * D) / 3)
    hidden = multiple_of * ((hidden + multiple_of - 1) // multiple_of)   # -> 768

    key = jax.random.PRNGKey(0)
    ks = jax.random.split(key, 10)
    std = 0.02
    params_f32 = {
        "attn_norm_w": jnp.ones((D,), jnp.float32),
        "ffn_norm_w": jnp.ones((D,), jnp.float32),
        "wq_t": std * jax.random.normal(ks[0], (D, D), jnp.float32),
        "wk_t": std * jax.random.normal(ks[1], (D, D), jnp.float32),
        "wv_t": std * jax.random.normal(ks[2], (D, D), jnp.float32),
        "wo_t": std * jax.random.normal(ks[3], (D, D), jnp.float32),
        "w1_t": std * jax.random.normal(ks[4], (D, hidden), jnp.float32),
        "w3_t": std * jax.random.normal(ks[5], (D, hidden), jnp.float32),
        "w2_t": std * jax.random.normal(ks[6], (hidden, D), jnp.float32),
    }
    # bf16 MXU operands; RMSNorm weights stay f32 (used in the f32 norm epilogue).
    params = {name: (w if name.endswith("norm_w") else w.astype(ACT_DTYPE))
              for name, w in params_f32.items()}

    rope = precompute_rope(Hd, MAX_SEQ)
    x = jax.random.normal(ks[7], (B, S, D), jnp.float32)

    # Small explicit tiles so the toy run exercises the multi-step accumulation / online-softmax
    # paths (at real sizes pass None to let _tile pick 128/256/512-sized blocks).
    out = transformer_block(x, params, rope, H, norm_eps=norm_eps,
                            tm=16, tn=128, tk=128, th=256, tq=8, tkv=8)
    out = jax.block_until_ready(out)

    causal = jnp.where(jnp.triu(jnp.ones((S, S), bool), k=1), -1e9, 0.0).astype(jnp.float32)
    ref = reference_block(x, params_f32, rope["cos_half"][:S], rope["sin_half"][:S],
                          causal, H, norm_eps)

    assert out.shape == (B, S, D)
    assert out.dtype == x.dtype
    assert bool(jnp.all(jnp.isfinite(out)))
    max_err = float(jnp.max(jnp.abs(out - ref)))
    assert bool(jnp.allclose(out, ref, rtol=2e-2, atol=2e-2)), \
        f"mismatch vs reference (max abs err {max_err})"
    print("KERNEL_OK")
</pallas_src>

<mosaic_0001>
module attributes {stable_mosaic.version = 11 : i64} {
  func.func @_norm_qkv_rope_kernel(%arg0: i32, %arg1: i32, %arg2: memref<16x256xbf16, #tpu.memory_space<vmem>>, %arg3: memref<1x256xf32, #tpu.memory_space<vmem>>, %arg4: memref<256x128xbf16, #tpu.memory_space<vmem>>, %arg5: memref<256x128xbf16, #tpu.memory_space<vmem>>, %arg6: memref<256x128xbf16, #tpu.memory_space<vmem>>, %arg7: memref<16x128xf32, #tpu.memory_space<vmem>>, %arg8: memref<16x128xf32, #tpu.memory_space<vmem>>, %arg9: memref<128x128xbf16, #tpu.memory_space<vmem>>, %arg10: memref<16x128xbf16, #tpu.memory_space<vmem>>, %arg11: memref<16x128xbf16, #tpu.memory_space<vmem>>, %arg12: memref<16x128xbf16, #tpu.memory_space<vmem>>, %arg13: memref<16x256xbf16, #tpu.memory_space<vmem>>) attributes {dimension_semantics = [#tpu.dimension_semantics<parallel>, #tpu.dimension_semantics<arbitrary>], iteration_bounds = array<i64: 2, 2>, scalar_prefetch = 0 : i64, scratch_operands = 1 : i64, tpu.core_type = #tpu.core_type<tc>, window_params = [{transform_indices = @transform_0, window_bounds = array<i64: 16, 256>}, {pipeline_mode = #tpu.pipeline_mode<synchronous>, transform_indices = @transform_1, window_bounds = array<i64: 1, 256>}, {transform_indices = @transform_2, window_bounds = array<i64: 256, 128>}, {transform_indices = @transform_3, window_bounds = array<i64: 256, 128>}, {transform_indices = @transform_4, window_bounds = array<i64: 256, 128>}, {transform_indices = @transform_5, window_bounds = array<i64: 16, 128>}, {transform_indices = @transform_6, window_bounds = array<i64: 16, 128>}, {pipeline_mode = #tpu.pipeline_mode<synchronous>, transform_indices = @transform_7, window_bounds = array<i64: 128, 128>}, {transform_indices = @transform_8, window_bounds = array<i64: 16, 128>}, {transform_indices = @transform_9, window_bounds = array<i64: 16, 128>}, {transform_indices = @transform_10, window_bounds = array<i64: 16, 128>}]} {
    %c0_i32 = arith.constant 0 : i32
    %0 = arith.cmpi eq, %arg1, %c0_i32 : i32
    %1 = arith.extui %0 : i1 to i32
    %c0_i32_0 = arith.constant 0 : i32
    %2 = arith.cmpi ne, %1, %c0_i32_0 : i32
    scf.if %2 {
      %c0_25 = arith.constant 0 : index
      %c0_26 = arith.constant 0 : index
      %31 = vector.load %arg2[%c0_25, %c0_26] : memref<16x256xbf16, #tpu.memory_space<vmem>>, vector<16x256xbf16>
      %32 = arith.extf %31 : vector<16x256xbf16> to vector<16x256xf32>
      %33 = arith.mulf %32, %32 : vector<16x256xf32>
      %cst_27 = arith.constant dense<0.000000e+00> : vector<16xf32>
      %34 = vector.multi_reduction <add>, %33, %cst_27 [1] : vector<16x256xf32> to vector<16xf32>
      %35 = vector.shape_cast %34 : vector<16xf32> to vector<16x1xf32>
      %cst_28 = arith.constant 2.560000e+02 : f32
      %36 = vector.broadcast %cst_28 : f32 to vector<16x1xf32>
      %37 = arith.divf %35, %36 : vector<16x1xf32>
      %cst_29 = arith.constant 9.99999974E-6 : f32
      %38 = vector.broadcast %cst_29 : f32 to vector<16x1xf32>
      %39 = arith.addf %37, %38 : vector<16x1xf32>
      %40 = math.rsqrt %39 : vector<16x1xf32>
      %41 = vector.broadcast %40 : vector<16x1xf32> to vector<16x256xf32>
      %42 = arith.mulf %32, %41 : vector<16x256xf32>
      %c0_30 = arith.constant 0 : index
      %c0_31 = arith.constant 0 : index
      %43 = vector.load %arg3[%c0_30, %c0_31] : memref<1x256xf32, #tpu.memory_space<vmem>>, vector<1x256xf32>
      %44 = vector.broadcast %43 : vector<1x256xf32> to vector<16x256xf32>
      %45 = arith.mulf %42, %44 : vector<16x256xf32>
      %46 = arith.truncf %45 : vector<16x256xf32> to vector<16x256xbf16>
      %c0_32 = arith.constant 0 : index
      %c0_33 = arith.constant 0 : index
      %47 = vector.load %arg13[%c0_32, %c0_33] : memref<16x256xbf16, #tpu.memory_space<vmem>>, vector<16x256xbf16>
      tpu.vector_store %arg13[%c0_32, %c0_33], %46 {strides = array<i32>} : memref<16x256xbf16, #tpu.memory_space<vmem>>, vector<16x256xbf16>,
    } else {
    }
    %c0 = arith.constant 0 : index
    %c0_1 = arith.constant 0 : index
    %3 = vector.load %arg13[%c0, %c0_1] : memref<16x256xbf16, #tpu.memory_space<vmem>>, vector<16x256xbf16>
    %c0_2 = arith.constant 0 : index
    %c0_3 = arith.constant 0 : index
    %4 = vector.load %arg7[%c0_2, %c0_3] : memref<16x128xf32, #tpu.memory_space<vmem>>, vector<16x128xf32>
    %c0_4 = arith.constant 0 : index
    %c0_5 = arith.constant 0 : index
    %5 = vector.load %arg8[%c0_4, %c0_5] : memref<16x128xf32, #tpu.memory_space<vmem>>, vector<16x128xf32>
    %c0_6 = arith.constant 0 : index
    %c0_7 = arith.constant 0 : index
    %6 = vector.load %arg9[%c0_6, %c0_7] : memref<128x128xbf16, #tpu.memory_space<vmem>>, vector<128x128xbf16>
    %c0_8 = arith.constant 0 : index
    %c0_9 = arith.constant 0 : index
    %7 = vector.load %arg4[%c0_8, %c0_9] : memref<256x128xbf16, #tpu.memory_space<vmem>>, vector<256x128xbf16>
    %cst = arith.constant dense<0.000000e+00> : vector<16x128xf32>
    %8 = tpu.matmul %3, %7, %cst {dimension_numbers = #tpu.dot_dimension_numbers<[1], [0], [0], [1], [0, 0, 1, 1], [], []>} : vector<16x256xbf16>, vector<256x128xbf16>, vector<16x128xf32> -> vector<16x128xf32>
    %c0_10 = arith.constant 0 : index
    %c0_11 = arith.constant 0 : index
    %9 = vector.load %arg5[%c0_10, %c0_11] : memref<256x128xbf16, #tpu.memory_space<vmem>>, vector<256x128xbf16>
    %cst_12 = arith.constant dense<0.000000e+00> : vector<16x128xf32>
    %10 = tpu.matmul %3, %9, %cst_12 {dimension_numbers = #tpu.dot_dimension_numbers<[1], [0], [0], [1], [0, 0, 1, 1], [], []>} : vector<16x256xbf16>, vector<256x128xbf16>, vector<16x128xf32> -> vector<16x128xf32>
    %c0_13 = arith.constant 0 : index
    %c0_14 = arith.constant 0 : index
    %11 = vector.load %arg6[%c0_13, %c0_14] : memref<256x128xbf16, #tpu.memory_space<vmem>>, vector<256x128xbf16>
    %cst_15 = arith.constant dense<0.000000e+00> : vector<16x128xf32>
    %12 = tpu.matmul %3, %11, %cst_15 {dimension_numbers = #tpu.dot_dimension_numbers<[1], [0], [0], [1], [0, 0, 1, 1], [], []>} : vector<16x256xbf16>, vector<256x128xbf16>, vector<16x128xf32> -> vector<16x128xf32>
    %13 = arith.truncf %8 : vector<16x128xf32> to vector<16x128xbf16>
    %cst_16 = arith.constant dense<0.000000e+00> : vector<16x128xf32>
    %14 = tpu.matmul %13, %6, %cst_16 {dimension_numbers = #tpu.dot_dimension_numbers<[1], [0], [0], [1], [0, 0, 1, 1], [], []>} : vector<16x128xbf16>, vector<128x128xbf16>, vector<16x128xf32> -> vector<16x128xf32>
    %15 = arith.mulf %8, %4 : vector<16x128xf32>
    %16 = arith.mulf %14, %5 : vector<16x128xf32>
    %17 = arith.addf %15, %16 : vector<16x128xf32>
    %cst_17 = arith.constant 1.250000e-01 : f32
    %18 = vector.broadcast %cst_17 : f32 to vector<16x128xf32>
    %19 = arith.mulf %17, %18 : vector<16x128xf32>
    %20 = arith.truncf %19 : vector<16x128xf32> to vector<16x128xbf16>
    %c0_18 = arith.constant 0 : index
    %c0_19 = arith.constant 0 : index
    %21 = vector.load %arg10[%c0_18, %c0_19] : memref<16x128xbf16, #tpu.memory_space<vmem>>, vector<16x128xbf16>
    tpu.vector_store %arg10[%c0_18, %c0_19], %20 {strides = array<i32>} : memref<16x128xbf16, #tpu.memory_space<vmem>>, vector<16x128xbf16>,
    %22 = arith.truncf %10 : vector<16x128xf32> to vector<16x128xbf16>
    %cst_20 = arith.constant dense<0.000000e+00> : vector<16x128xf32>
    %23 = tpu.matmul %22, %6, %cst_20 {dimension_numbers = #tpu.dot_dimension_numbers<[1], [0], [0], [1], [0, 0, 1, 1], [], []>} : vector<16x128xbf16>, vector<128x128xbf16>, vector<16x128xf32> -> vector<16x128xf32>
    %24 = arith.mulf %10, %4 : vector<16x128xf32>
    %25 = arith.mulf %23, %5 : vector<16x128xf32>
    %26 = arith.addf %24, %25 : vector<16x128xf32>
    %27 = arith.truncf %26 : vector<16x128xf32> to vector<16x128xbf16>
    %c0_21 = arith.constant 0 : index
    %c0_22 = arith.constant 0 : index
    %28 = vector.load %arg11[%c0_21, %c0_22] : memref<16x128xbf16, #tpu.memory_space<vmem>>, vector<16x128xbf16>
    tpu.vector_store %arg11[%c0_21, %c0_22], %27 {strides = array<i32>} : memref<16x128xbf16, #tpu.memory_space<vmem>>, vector<16x128xbf16>,
    %29 = arith.truncf %12 : vector<16x128xf32> to vector<16x128xbf16>
    %c0_23 = arith.constant 0 : index
    %c0_24 = arith.constant 0 : index
    %30 = vector.load %arg12[%c0_23, %c0_24] : memref<16x128xbf16, #tpu.memory_space<vmem>>, vector<16x128xbf16>
    tpu.vector_store %arg12[%c0_23, %c0_24], %29 {strides = array<i32>} : memref<16x128xbf16, #tpu.memory_space<vmem>>, vector<16x128xbf16>,
    return
  }
  func.func @transform_0(%arg0: i32, %arg1: i32) -> (i32, i32) {
    %c0_i32 = arith.constant 0 : i32
    %c0_i32_0 = arith.constant 0 : i32
    return %arg0, %c0_i32 : i32, i32
  }
  func.func @transform_1(%arg0: i32, %arg1: i32) -> (i32, i32) {
    %c0_i32 = arith.constant 0 : i32
    %c0_i32_0 = arith.constant 0 : i32
    %c0_i32_1 = arith.constant 0 : i32
    return %c0_i32, %c0_i32_0 : i32, i32
  }
  func.func @transform_2(%arg0: i32, %arg1: i32) -> (i32, i32) {
    %c0_i32 = arith.constant 0 : i32
    %c0_i32_0 = arith.constant 0 : i32
    return %c0_i32, %arg1 : i32, i32
  }
  func.func @transform_3(%arg0: i32, %arg1: i32) -> (i32, i32) {
    %c0_i32 = arith.constant 0 : i32
    %c0_i32_0 = arith.constant 0 : i32
    return %c0_i32, %arg1 : i32, i32
  }
  func.func @transform_4(%arg0: i32, %arg1: i32) -> (i32, i32) {
    %c0_i32 = arith.constant 0 : i32
    %c0_i32_0 = arith.constant 0 : i32
    return %c0_i32, %arg1 : i32, i32
  }
  func.func @transform_5(%arg0: i32, %arg1: i32) -> (i32, i32) {
    %c1_i32 = arith.constant 1 : i32
    %c0_i32 = arith.constant 0 : i32
    %0 = arith.cmpi eq, %c1_i32, %c0_i32 : i32
    %c1_i32_0 = arith.constant 1 : i32
    %1 = arith.select %0, %c1_i32_0, %c1_i32 : i32
    %2 = arith.remsi %arg0, %1 : i32
    %c0_i32_1 = arith.constant 0 : i32
    %3 = arith.cmpi ne, %2, %c0_i32_1 : i32
    %c0_i32_2 = arith.constant 0 : i32
    %4 = arith.cmpi slt, %2, %c0_i32_2 : i32
    %c0_i32_3 = arith.constant 0 : i32
    %5 = arith.cmpi slt, %1, %c0_i32_3 : i32
    %6 = arith.xori %4, %5 : i1
    %7 = arith.andi %6, %3 : i1
    %8 = arith.addi %2, %1 : i32
    %9 = arith.select %7, %8, %2 : i32
    %c0_i32_4 = arith.constant 0 : i32
    return %9, %arg1 : i32, i32
  }
  func.func @transform_6(%arg0: i32, %arg1: i32) -> (i32, i32) {
    %c1_i32 = arith.constant 1 : i32
    %c0_i32 = arith.constant 0 : i32
    %0 = arith.cmpi eq, %c1_i32, %c0_i32 : i32
    %c1_i32_0 = arith.constant 1 : i32
    %1 = arith.select %0, %c1_i32_0, %c1_i32 : i32
    %2 = arith.remsi %arg0, %1 : i32
    %c0_i32_1 = arith.constant 0 : i32
    %3 = arith.cmpi ne, %2, %c0_i32_1 : i32
    %c0_i32_2 = arith.constant 0 : i32
    %4 = arith.cmpi slt, %2, %c0_i32_2 : i32
    %c0_i32_3 = arith.constant 0 : i32
    %5 = arith.cmpi slt, %1, %c0_i32_3 : i32
    %6 = arith.xori %4, %5 : i1
    %7 = arith.andi %6, %3 : i1
    %8 = arith.addi %2, %1 : i32
    %9 = arith.select %7, %8, %2 : i32
    %c0_i32_4 = arith.constant 0 : i32
    return %9, %arg1 : i32, i32
  }
  func.func @transform_7(%arg0: i32, %arg1: i32) -> (i32, i32) {
    %c0_i32 = arith.constant 0 : i32
    %c0_i32_0 = arith.constant 0 : i32
    %c0_i32_1 = arith.constant 0 : i32
    return %c0_i32, %c0_i32_0 : i32, i32
  }
  func.func @transform_8(%arg0: i32, %arg1: i32) -> (i32, i32) {
    %c0_i32 = arith.constant 0 : i32
    return %arg0, %arg1 : i32, i32
  }
  func.func @transform_9(%arg0: i32, %arg1: i32) -> (i32, i32) {
    %c0_i32 = arith.constant 0 : i32
    return %arg0, %arg1 : i32, i32
  }
  func.func @transform_10(%arg0: i32, %arg1: i32) -> (i32, i32) {
    %c0_i32 = arith.constant 0 : i32
    return %arg0, %arg1 : i32, i32
  }
}

</mosaic_0001>

<bundles_post_ra>
// kernel: tpu_custom_call.1
= control target key start
LH: loop header
LB: loop body
LE: loop exit
PB: predicated region body
PF: predicated region fallthrough
CT: control target
= control target key end

     0   :  { %s3241_s0 = inlined_call_operand.hbm [shape: bf16[32,256], index: 0, kind: input, shape index: {}]   ;;  %s3242_s1 = inlined_call_operand.hbm [shape: f32[1,256], index: 1, kind: input, shape index: {}]   ;;  %s3243_s2 = inlined_call_operand.hbm [shape: bf16[256,256], index: 2, kind: input, shape index: {}]   ;;  %s3244_s3 = inlined_call_operand.hbm [shape: bf16[256,256], index: 3, kind: input, shape index: {}]   ;;  %s3245_s4 = inlined_call_operand.hbm [shape: bf16[256,256], index: 4, kind: input, shape index: {}]   ;;  %s3246_s5 = inlined_call_operand.hbm [shape: f32[16,256], index: 5, kind: input, shape index: {}]   ;;  %s3247_s6 = inlined_call_operand.hbm [shape: f32[16,256], index: 6, kind: input, shape index: {}]   ;;  %s3248_s7 = inlined_call_operand.hbm [shape: bf16[128,128], index: 7, kind: input, shape index: {}]   ;;  %s3249_s8 = inlined_call_operand.hbm [shape: bf16[32,256], index: 8, kind: output, shape index: {0}]   ;;  %s3250_s9 = inlined_call_operand.hbm [shape: bf16[32,256], index: 9, kind: output, shape index: {1}]   ;;  %s3251_s10 = inlined_call_operand.hbm [shape: bf16[32,256], index: 10, kind: output, shape index: {2}]  }
   0x1   :  { %3274 = sst [smem:[#allocation40_spill]] %s3241_s0 }
   0x2   :  { %3275 = sst [smem:[#allocation41_spill]] %s3242_s1 }
   0x3   :  { %3276 = sst [smem:[#allocation42_spill]] %s3243_s2 }
   0x4   :  { %3277 = sst [smem:[#allocation43_spill]] %s3244_s3 }
   0x5   :  { %3278 = sst [smem:[#allocation44_spill]] %s3245_s4 }
   0x6   :  { %3279 = sst [smem:[#allocation45_spill]] %s3246_s5 }
   0x7   :  { %3280 = sst [smem:[#allocation46_spill]] %s3247_s6 }
   0x8   :  { %3281 = sst [smem:[#allocation47_spill]] %s3248_s7 }
   0x9   :  { %3282 = sst [smem:[#allocation48_spill]] %s3249_s8 }
   0xa   :  { %3283 = sst [smem:[#allocation49_spill]] %s3250_s9 }
   0xb   :  { %3284 = sst [smem:[#allocation50_spill]] %s3251_s10 }
   0xc   :  { %16 = vsyncpa [#allocation4], 0 }
   0xd   :  { %18 = vsyncpa [#allocation4 + $0x1], 0 }
   0xe   :  { %19 = vsyncpa [#allocation7], 0 }
   0xf   :  { %20 = vsyncpa [#allocation5], 0 }
  0x10   :  { %22 = vsyncpa [#allocation5 + $0x1], 0 }
  0x11   :  { %23 = vsyncpa [#allocation16], 0 }
  0x12   :  { %25 = vsyncpa [#allocation16 + $0x1], 0  ;;  %s2733_s13 = smov 0   ;;  %s2735_s14 = smov 0  }
  0x13   :  { %s2737_s15 = smov 0   ;;  %s2739_s16 = smov 0  }
  0x14   :  { %s2741_s17 = smov 0   ;;  %s2743_s18 = smov 0  }
  0x15   :  { %s2745_s19 = smov 0   ;;  %s2747_s20 = smov 0  }
  0x16   :  { %s2749_s21 = smov 0   ;;  %s2751_s22 = smov 0  }
  0x17   :  { %s2753_s23 = smov 0   ;;  %s2755_s24 = smov 0  }
  0x18   :  { %s2757_s25 = smov 0   ;;  %s2759_s26 = smov 0  }
  0x19 LB: > { %3285 = sst [smem:[#allocation24_spill]] %s2613_s13  ;;  %s40_s27 = sadd.s32 1, %s2657_s24  ;;  %s2665_s26 = sphi %s2759_s26, %s31_s26   ;;  %s2661_s25 = sphi %s2757_s25, %s3346_s25   ;;  %s2657_s24 = sphi %s2755_s24, %s3345_s24   ;;  %s2653_s23 = sphi %s2753_s23, %s3344_s23   ;;  %s2649_s22 = sphi %s2751_s22, %s3343_s22   ;;  %s2645_s21 = sphi %s2749_s21, %s3353_s21   ;;  %s2641_s20 = sphi %s2747_s20, %s3352_s20   ;;  %s2637_s19 = sphi %s2745_s19, %s3351_s19   ;;  %s2633_s18 = sphi %s2743_s18, %s3340_s18   ;;  %s2629_s17 = sphi %s2741_s17, %s3350_s17   ;;  %s2625_s16 = sphi %s2739_s16, %s3349_s16   ;;  %s2621_s15 = sphi %s2737_s15, %s3338_s15   ;;  %s2617_s14 = sphi %s2735_s14, %s3348_s14   ;;  %s2613_s13 = sphi %s2733_s13, %s3347_s13  }
  0x1a   : > { %3286 = sst [smem:[#allocation25_spill]] %s2621_s15  ;;  %s43_s28 = sadd.s32 1, %s2661_s25 }
  0x1b   : > { %3287 = sst [smem:[#allocation26_spill]] %s2633_s18  ;;  %p41_p0 = scmp.ge.s32.totalorder %s40_s27, 2 }
  0x1c   : > { %3288 = sst [smem:[#allocation27_spill]] %s2645_s21  ;;  %s50_s29 = sadd.s32 1, %s2645_s21 }
  0x1d   : > { %3289 = sst [smem:[#allocation28_spill]] %s2649_s22  ;;  %p57_p1 = scmp.ne.s32.totalorder %s2645_s21, %s2641_s20 }
  0x1e   : > { %3290 = sst [smem:[#allocation29_spill]] %s2653_s23  ;;  %p58_p2 = scmp.eq.s32.totalorder %s2665_s26, 0 }
  0x1f   : > { %3291 = sst [smem:[#allocation30_spill]] %s2657_s24  ;;  %s3355_s27 = smov (%p41_p0, %s40_s27), 0 }
  0x20   : > { %3292 = sst [smem:[#allocation31_spill]] %s2661_s25  ;;  %s3357_s28 = smov (!%p41_p0, %s43_s28), %s2661_s25 }
  0x21   : > { %3293 = sst [smem:[#allocation32_spill]] %s2665_s26  ;;  %p2812_p3 = por %p58_p2, %p57_p1 }
  0x22   : > { %3294 = sst [smem:[#allocation33_spill]] %s3355_s27  ;;  %s94_s11 = ssub.s32 %s2657_s24, %s3355_s27 }
  0x23   : > { %p45_p4 = scmp.ge.s32.totalorder %s3357_s28, 2  ;;  %p95_p5 = scmp.eq.s32.totalorder %s94_s11, 0 }
  0x24   : > { %s97_s12 = sadd.s32 1, %s2633_s18  ;;  %p104_p6 = scmp.ne.s32.totalorder %s2633_s18, %s2629_s17 }
  0x25   : > { %s3359_s28 = smov (%p45_p4, %s3357_s28), 0  ;;  %p2074_p10 = scmp.lt.s32.totalorder %s2665_s26, 4 }
  0x26   : > { %3296 = sst [smem:[#allocation34_spill]] %s3359_s28  ;;  %s47_s9 = ssub.s32 %s2661_s25, %s3359_s28 }
  0x27   : > { %s2824_s10 = scalar_select %p95_p5, %s2633_s18, %s97_s12  }
  0x28   : > { %p2828_p7 = por %p104_p6, %p58_p2  ;;  %p48_p8 = scmp.eq.s32.totalorder %s47_s9, 0 }
  0x29   : > { %3297 = sst [smem:[#allocation35_spill]] %s2824_s10  ;;  %s247_s23 = sor.u32 %s94_s11, %s47_s9 }
  0x2a   : > { %p2832_p9 = scmp.eq.s32.totalorder %s247_s23, 0  ;;  %s369_s6 = sand.u32 1, %s2665_s26  }
  0x2b   : > { %s2837_s22 = scalar_select %p48_p8, %s2645_s21, %s50_s29  }
  0x2c   : > { %s371_s12 = sand.u32 1, %s2645_s21   ;;  %s1933_s10 = sshll.u32 %s2661_s25, 4 }
  0x2d   : > { %3300 = sst [smem:[#allocation36_spill]] %s2837_s22  ;;  %s1659_s28 = sshll.u32 %s371_s12, 4 }
  0x2e   : > { %s3301_s0 = sld [smem:[#allocation40_spill]]  ;;  %s373_s9 = scalar_lea.vmem [#allocation3], %s1659_s28 }
  0x2f   : > { %s382_s23 = sshll.u32 %s373_s9, 4  ;;  %p2044_p11 = pnand %p2074_p10, %p2812_p3  ;;  %s383_s23 = int_to_ptr.vmem [resolvable:$true] %s382_s23 }
  0x30   : > { %p2850_p12 = pnand %p2074_p10, %p2828_p7  ;;  %s2854_s11 = scalar_lea.sflag [#allocation4], %s369_s6 }
  0x31   : > { %s3263_s12 = smov 128   ;;  %s3258_s5 = smov 8  }
  0x32   : > { %s1664_s7 = sshll.u32 %s2657_s24, 2  ;;  %s3303_s2 = sld [smem:[#allocation42_spill]] }
  0x33   : > { %s3261_s25 = smov 64   ;;  %s3262_s22 = smov 4  }
  0x34   : > { %s379_s1 = scalar_lea.hbm %s3301_s0, %s1933_s10  ;;  %s3304_s3 = sld [smem:[#allocation43_spill]] }
  0x35   : > { %s380_s13 = sshll.u32 %s379_s1, 4  ;;  %s394_s1 = sand.u32 1, %s2633_s18   ;;  %s381_s13 = int_to_ptr.hbm [resolvable:$true] %s380_s13 }
  0x36   : > { %2046 = dma.hbm_to_vmem [thread:$0]  (!%p2044_p11), %s381_s13, 256, %s383_s23, %s2854_s11, %s3263_s12, %s3263_s12, %s3258_s5  }
  0x37   : > { %s1663_s10 = sshll.u32 %s394_s1, 7  ;;  %s3305_s4 = sld [smem:[#allocation44_spill]] }
  0x38   : > { %s400_s30 = scalar_lea.hbm %s3303_s2, %s1664_s7  ;;  %s396_s9 = scalar_lea.vmem [#allocation8], %s1663_s10 }
  0x39   : > { %s401_s6 = sshll.u32 %s400_s30, 4  ;;  %s403_s0 = sshll.u32 %s396_s9, 4  ;;  %s402_s6 = int_to_ptr.hbm [resolvable:$true] %s401_s6  ;;  %s404_s0 = int_to_ptr.vmem [resolvable:$true] %s403_s0 }
  0x3a   : > { %2049 = dma.hbm_to_vmem [thread:$0]  (!%p2850_p12), %s402_s6, 2048, %s404_s0, %s2854_s11, %s3263_s12, %s3261_s25, %s3262_s22  }
  0x3b   : > { %s421_s8 = scalar_lea.hbm %s3304_s3, %s1664_s7  ;;  %s417_s28 = scalar_lea.vmem [#allocation9], %s1663_s10 }
  0x3c   : > { %s424_s30 = sshll.u32 %s417_s28, 4  ;;  %s422_s9 = sshll.u32 %s421_s8, 4  ;;  %s425_s30 = int_to_ptr.vmem [resolvable:$true] %s424_s30  ;;  %s423_s9 = int_to_ptr.hbm [resolvable:$true] %s422_s9 }
  0x3d   : > { %2052 = dma.hbm_to_vmem [thread:$0]  (!%p2850_p12), %s423_s9, 2048, %s425_s30, %s2854_s11, %s3263_s12, %s3261_s25, %s3262_s22  }
  0x3e   : > { %s442_s13 = scalar_lea.hbm %s3305_s4, %s1664_s7  ;;  %s438_s23 = scalar_lea.vmem [#allocation10], %s1663_s10 }
  0x3f   : > { %s445_s28 = sshll.u32 %s438_s23, 4  ;;  %s3306_s5 = sld [smem:[#allocation24_spill]]  ;;  %s446_s28 = int_to_ptr.vmem [resolvable:$true] %s445_s28 }
  0x40   : > { %s443_s8 = sshll.u32 %s442_s13, 4  ;;  %s2892_s30 = sadd.s32 4294967295, %s2665_s26   ;;  %s444_s8 = int_to_ptr.hbm [resolvable:$true] %s443_s8 }
  0x41   : > { %2055 = dma.hbm_to_vmem [thread:$0]  (!%p2850_p12), %s444_s8, 2048, %s446_s28, %s2854_s11, %s3263_s12, %s3261_s25, %s3262_s22  }
  0x42   : > { %s3260_s7 = sadd.s32 4294967294, %s2665_s26   ;;  %p63_p13 = scmp.ne.s32.totalorder %s2641_s20, %s2637_s19 }
  0x43   : > { %p64_p0 = scmp.eq.s32.totalorder %s2892_s30, 0  ;;  %p110_p1 = scmp.ne.s32.totalorder %s2629_s17, %s2625_s16 }
  0x44   : > { %s250_s10 = sadd.s32 1, %s2621_s15  ;;  %p260_p2 = scmp.ne.s32.totalorder %s2621_s15, %s2617_s14 }
  0x45   : > { %p2905_p3 = por %p64_p0, %p63_p13  ;;  %p2911_p4 = por %p110_p1, %p64_p0 }
  0x46   : > { %s2918_s6 = scalar_select %p2832_p9, %s2621_s15, %s250_s10  }
  0x47   : > { %p261_p5 = scmp.eq.s32.totalorder %s2892_s30, 3  ;;  %p266_p6 = scmp.ne.s32.totalorder %s2617_s14, %s3306_s5 }
  0x48   : > { %3309 = sst [smem:[#allocation37_spill]] %s2918_s6  ;;  %p267_p7 = scmp.eq.s32.totalorder %s3260_s7, 3 }
  0x49   : > { %p1655_p8 = scmp.ge.s32.totalorder %s2665_s26, 1  ;;  %p2926_p10 = por %p261_p5, %p260_p2 }
  0x4a   : > { %p330_p11 = scmp.lt.s32.totalorder %s2665_s26, 5  ;;  %p2931_p13 = por %p267_p7, %p266_p6 }
  0x4b   : > { %s3310_s16 = scalar_select %p2926_p10, 1, 0 }
  0x4c   : > { %s3312_s19 = scalar_select %p2931_p13, 1, 0 }
  0x4d   : > { %3311 = sst [smem:[#allocation38_spill]] %s3310_s16  ;;  %p2935_p1 = pnand %p1655_p8, %p330_p11 }
  0x4e   : > { %3313 = sst [smem:[#allocation39_spill]] %s3312_s19  ;;  %s2671_s8 = smov [#allocation6]  }
  0x4f   : > { %s3315_s28 = sld [smem:[#allocation41_spill]]  ;;  %p2036_p9 = pneg %p2935_p1 }
  0x50   : > { %s344_s10 = sshll.u32 %s2671_s8, 4  ;;  %s1669_s7 = sshll.u32 %s394_s1, 4  ;;  %s345_s10 = int_to_ptr.vmem [resolvable:$true] %s344_s10 }
  0x51   : > { %p2948_p2 = pnand %p2036_p9, %p64_p0  ;;  %s1670_s13 = sshll.u32 %s2657_s24, 3 }
  0x52   : > { %s459_s23 = scalar_lea.vmem [#allocation11], %s1669_s7  ;;  %s3317_s2 = sld [smem:[#allocation45_spill]] }
  0x53   : > { %s2672_s1 = smov 256   ;;  %s3318_s4 = smov 8  }
  0x54   : > { %s3319_s21 = smov 128   ;;  %s3320_s6 = sld [smem:[#allocation47_spill]] }
  0x55   : > { %s342_s5 = sshll.u32 %s3315_s28, 4  ;;  %s466_s28 = sshll.u32 %s459_s23, 4  ;;  %s343_s5 = int_to_ptr.hbm [resolvable:$true] %s342_s5  ;;  %s467_s28 = int_to_ptr.vmem [resolvable:$true] %s466_s28 }
  0x56   : > { %2039 = dma.hbm_to_vmem [thread:$0]  (!%p2948_p2), %s343_s5, 32, %s345_s10, [#allocation7]  }
  0x57   : > { %s2673_s15 = smov [#allocation13]   ;;  %s3323_s10 = sld [smem:[#allocation46_spill]] }
  0x58   : > { %s463_s3 = scalar_lea.hbm %s3317_s2, %s1670_s13  ;;  %s355_s22 = sshll.u32 %s2673_s15, 4  ;;  %s356_s22 = int_to_ptr.vmem [resolvable:$true] %s355_s22 }
  0x59   : > { %s464_s8 = sshll.u32 %s463_s3, 4  ;;  %s3321_s2 = smov 4   ;;  %s465_s8 = int_to_ptr.hbm [resolvable:$true] %s464_s8 }
  0x5a   : > { %2058 = dma.hbm_to_vmem [thread:$0]  (!%p2850_p12), %s465_s8, 256, %s467_s28, %s2854_s11, %s2672_s1, %s3319_s21, %s3318_s4  }
  0x5b   : > { %s353_s23 = sshll.u32 %s3320_s6, 4  ;;  %s3322_s3 = smov 64   ;;  %s354_s23 = int_to_ptr.hbm [resolvable:$true] %s353_s23 }
  0x5c   : > { %2042 = dma.hbm_to_vmem [thread:$0]  (!%p2948_p2), %s354_s23, 1024, %s356_s22, [#allocation7], %s3322_s3, %s3322_s3, %s3321_s2  }
  0x5d   : > { %s484_s19 = scalar_lea.hbm %s3323_s10, %s1670_s13  ;;  %s480_s26 = scalar_lea.vmem [#allocation12], %s1669_s7 }
  0x5e   : > { %s487_s16 = sshll.u32 %s480_s26, 4  ;;  %s485_s28 = sshll.u32 %s484_s19, 4  ;;  %s488_s16 = int_to_ptr.vmem [resolvable:$true] %s487_s16  ;;  %s486_s28 = int_to_ptr.hbm [resolvable:$true] %s485_s28 }
  0x5f   : > { %2061 = dma.hbm_to_vmem [thread:$0]  (!%p2850_p12), %s486_s28, 256, %s488_s16, %s2854_s11, %s2672_s1, %s3319_s21, %s3318_s4  }
  0x60   : > { %499 = sbr.rel (%p2935_p1) target bundleno = 639 (0x27f), region = 52  ;;  %s501_s15 = sand.u32 (!%p2935_p1), 1, %s2892_s30  }
  0x61   : > { %s503_s18 = sand.u32 (!%p2935_p1), 1, %s2641_s20   ;;  %s502_s25 = scalar_lea.sflag (!%p2935_p1), [#allocation4], %s501_s15 }
  0x62   : > { %s1674_s24 = sshll.u32 (!%p2935_p1), %s503_s18, 4 }
  0x63   : > { %s505_s26 = scalar_lea.vmem (!%p2935_p1), [#allocation3], %s1674_s24 }
  0x65   : > { %2588 = dma.done.wait (%p2905_p3), %s502_s25, 256  }
  0x66   : > { %2590 = vsyncadd (%p2905_p3), %s502_s25, 4294967040 }
  0x67   : > { %2592 = dma.done.wait (%p64_p0), [#allocation7], 32  }
  0x68   : > { %2594 = vsyncadd (%p64_p0), [#allocation7], 4294967264  ;;  %s518_s4 = sand.u32 1, %s2629_s17  }
  0x69   : > { %s1676_s21 = sshll.u32 %s518_s4, 7 }
  0x6a   : > { %s2994_s29 = scalar_lea.vmem [#allocation8], %s1676_s21 }
  0x6b   : > { %2596 = dma.done.wait (%p2911_p4), %s502_s25, 6656  }
  0x6c   : > { %2598 = vsyncadd (%p2911_p4), %s502_s25, 4294960640  ;;  %s3000_s11 = sshll.u32 %s518_s4, 4  ;;  %s3002_s7 = scalar_lea.vmem [#allocation9], %s1676_s21 }
  0x6d   : > { %s3004_s9 = scalar_lea.vmem [#allocation10], %s1676_s21  ;;  %s550_s6 = scalar_lea.vmem [#allocation11], %s3000_s11 }
  0x6e   : > { %s560_s16 = scalar_lea.vmem [#allocation12], %s3000_s11 }
  0x6f   : > { %2600 = dma.done.wait (%p64_p0), [#allocation7], 1024  }
  0x70   : > { %2602 = vsyncadd (%p64_p0), [#allocation7], 4294966272  ;;  %s621_s0 = sand.u32 1, %s2617_s14   ;;  %s3324_s1 = sld [smem:[#allocation28_spill]] }
  0x71   : > { %s3015_s19 = sshll.u32 %s621_s0, 3 }
  0x72   : > { %s623_s27 = scalar_lea.vmem [#allocation14], %s3015_s19  ;;  %s630_s13 = scalar_lea.vmem [#allocation15], %s3015_s19 }
  0x73   : > { %s637_s8 = scalar_lea.vmem [#allocation17], %s3015_s19 }
  0x76   : > { %p1685_p12 = scmp.ne.s32.totalorder %s3324_s1, 0 }
  0x78   : > { %645 = sbr.rel (%p1685_p12) target bundleno = 285 (0x11d), region = 88 }
  0x7d   : > { %v646_v0 = vld [vmem:[%s505_s26] sm:$0xff]  ;;  %v647_v1 = vld [vmem:[%s505_s26 + $0x8] sm:$0xff]  ;;  %v2674_v12 = vmov 256.0  }
  0x7e   : > { %v648_v2 = vunpack.c.l.bf16 %v646_v0  ;;  %v649_v3 = vunpack.c.h.bf16 %v646_v0  ;;  %v650_v6 = vunpack.c.l.bf16 %v647_v1  ;;  %v651_v7 = vunpack.c.h.bf16 %v647_v1  ;;  %v697_v29 = vld [vmem:[#allocation6] sm:$0x3] }
  0x7f   : > { %2201 = vrcp.f32 %v2674_v12  ;;  %v699_v34 = vperm.slane %v697_v29, 0  ;;  %v700_v35 = vperm.slane %v697_v29, 1 }
  0x80   : > { %v652_v4 = vmul.f32 %v648_v2, %v648_v2  ;;  %v653_v5 = vmul.f32 %v649_v3, %v649_v3  ;;  %v654_v9 = vmul.f32 %v650_v6, %v650_v6  ;;  %v655_v10 = vmul.f32 %v651_v7, %v651_v7 }
  0x82   : > { %v656_v8 = vadd.f32 %v653_v5, %v652_v4  ;;  %v659_v11 = vadd.f32 %v655_v10, %v654_v9 }
  0x84   : > { %657 = vadd.xlane.f32.xlu0 %v656_v8 }
  0x85   : > { %v2202_v13 = vpop.eup %2201 }
  0x86   : > { %v663_v14 = vmul.f32 256.0, %v2202_v13  ;;  %vm667_vm0 = vweird.f32 %v2202_v13 }
  0x88   : > { %v664_v15 = vsub.f32 1.0, %v663_v14 }
  0x8a   : > { %v665_v16 = vmul.f32 %v2202_v13, %v664_v15 }
  0x8c   : > { %660 = vadd.xlane.f32.xlu0 %v659_v11  ;;  %v666_v17 = vadd.f32 %v2202_v13, %v665_v16 }
  0x8e   : > { %v668_v18 = vsel %vm667_vm0, %v2202_v13, %v666_v17 }
  0xf7   : > { %v658_v19 = vpop.xlane.xlu0 %657 }
  0xf8   : > { %v669_v20 = vmul.f32 %v668_v18, %v658_v19 }
  0xfa   : > { %v671_v21 = vadd.f32 1e-05, %v669_v20 }
  0xfc   : > { %2203 = vrsqrt.f32 %v671_v21  ;;  %vm679_vm2 = vweird.f32 %v671_v21 }
  0xff   : > { %v661_v22 = vpop.xlane.xlu0 %660 }
 0x100   : > { %v670_v23 = vmul.f32 %v668_v18, %v661_v22 }
 0x102   : > { %v2204_v24 = vpop.eup %2203  ;;  %v672_v25 = vadd.f32 1e-05, %v670_v23 }
 0x103   : > { %v674_v26 = vmul.f32 %v2204_v24, %v671_v21  ;;  %vm680_vm1 = vweird.f32 %v2204_v24 }
 0x104   : > { %2205 = vrsqrt.f32 %v672_v25  ;;  %vm681_vm3 = vmor %vm679_vm2, %vm680_vm1  ;;  %vm689_vm5 = vweird.f32 %v672_v25 }
 0x105   : > { %v675_v27 = vmul.f32 %v2204_v24, %v674_v26 }
 0x107   : > { %v676_v28 = vmul.f32 0.5, %v675_v27 }
 0x109   : > { %v677_v30 = vsub.f32 1.5, %v676_v28 }
 0x10a   : > { %v2206_v31 = vpop.eup %2205 }
 0x10b   : > { %v678_v32 = vmul.f32 %v2204_v24, %v677_v30  ;;  %v684_v33 = vmul.f32 %v2206_v31, %v672_v25  ;;  %vm690_vm4 = vweird.f32 %v2206_v31 }
 0x10c   : > { %vm691_vm6 = vmor %vm689_vm5, %vm690_vm4 }
 0x10d   : > { %v682_v36 = vsel %vm681_vm3, %v2204_v24, %v678_v32  ;;  %v685_v37 = vmul.f32 %v2206_v31, %v684_v33 }
 0x10e   : > { %v693_v38 = vmul.f32 %v682_v36, %v648_v2  ;;  %v694_v39 = vmul.f32 %v682_v36, %v649_v3 }
 0x10f   : > { %v686_v40 = vmul.f32 0.5, %v685_v37 }
 0x110   : > { %v703_v41 = vmul.f32 %v699_v34, %v693_v38  ;;  %v704_v42 = vmul.f32 %v700_v35, %v694_v39 }
 0x111   : > { %v687_v43 = vsub.f32 1.5, %v686_v40 }
 0x112   : > { %v707_v44 = vpack.c.bf16 %v704_v42, %v703_v41 }
 0x113   : > { %v688_v45 = vmul.f32 %v2206_v31, %v687_v43 }
 0x114   : > { %709 = vst [vmem:[#allocation2] sm:$0xff] %v707_v44 }
 0x115   : > { %v692_v46 = vsel %vm691_vm6, %v2206_v31, %v688_v45 }
 0x116   : > { %v695_v47 = vmul.f32 %v692_v46, %v650_v6  ;;  %v696_v48 = vmul.f32 %v692_v46, %v651_v7 }
 0x118   : > { %v705_v49 = vmul.f32 %v699_v34, %v695_v47  ;;  %v706_v50 = vmul.f32 %v700_v35, %v696_v48 }
 0x11a   : > { %v708_v51 = vpack.c.bf16 %v706_v50, %v705_v49 }
 0x11c   : > { %710 = vst [vmem:[#allocation2 + $0x8] sm:$0xff] %v708_v51 }
 0x11d PF: > { %v1951_v52 = vld [vmem:[%s2994_s29 + $0x38] sm:$0xff]  ;;  %v1950_v56 = vld [vmem:[%s2994_s29 + $0x30] sm:$0xff]  ;;  %v1949_v60 = vld [vmem:[%s2994_s29 + $0x28] sm:$0xff]  ;;  %s3325_s23 = sld [smem:[#allocation29_spill]] }
 0x11e   : > { %v1959_v53 = vld [vmem:[%s2994_s29 + $0x78] sm:$0xff]  ;;  %871 = vmatpush.bf16.msra.mxu0 %v1951_v52  ;;  %v1958_v57 = vld [vmem:[%s2994_s29 + $0x70] sm:$0xff]  ;;  %v1957_v61 = vld [vmem:[%s2994_s29 + $0x68] sm:$0xff]  ;;  %s3326_s22 = sld [smem:[#allocation28_spill]] }
 0x11f   : > { %v1967_v54 = vld [vmem:[%s3002_s7 + $0x38] sm:$0xff]  ;;  %885 = vmatpush.bf16.msra.mxu1 %v1959_v53  ;;  %v1966_v58 = vld [vmem:[%s3002_s7 + $0x30] sm:$0xff]  ;;  %v1965_v62 = vld [vmem:[%s3002_s7 + $0x28] sm:$0xff]  ;;  %s3327_s28 = sld [smem:[#allocation48_spill]] }
 0x120   : > { %v1975_v55 = vld [vmem:[%s3002_s7 + $0x78] sm:$0xff]  ;;  %1027 = vmatpush.bf16.msra.mxu2 %v1967_v54  ;;  %v1974_v59 = vld [vmem:[%s3002_s7 + $0x70] sm:$0xff]  ;;  %v1973_v63 = vld [vmem:[%s3002_s7 + $0x68] sm:$0xff]  ;;  %s3328_s26 = sld [smem:[#allocation49_spill]] }
 0x121   : > { %1041 = vmatpush.bf16.msra.mxu3 %v1975_v55  ;;  %v1948_v0 = vld [vmem:[%s2994_s29 + $0x20] sm:$0xff]  ;;  %v1947_v4 = vld [vmem:[%s2994_s29 + $0x18] sm:$0xff]  ;;  %v1946_v8 = vld [vmem:[%s2994_s29 + $0x10] sm:$0xff] }
 0x122   : > { %872 = vmatpush.bf16.msra.mxu0 %v1950_v56  ;;  %v1956_v1 = vld [vmem:[%s2994_s29 + $0x60] sm:$0xff]  ;;  %v1955_v5 = vld [vmem:[%s2994_s29 + $0x58] sm:$0xff]  ;;  %v1954_v9 = vld [vmem:[%s2994_s29 + $0x50] sm:$0xff] }
 0x123   : > { %886 = vmatpush.bf16.msra.mxu1 %v1958_v57  ;;  %v1964_v2 = vld [vmem:[%s3002_s7 + $0x20] sm:$0xff]  ;;  %v1963_v6 = vld [vmem:[%s3002_s7 + $0x18] sm:$0xff]  ;;  %v1962_v10 = vld [vmem:[%s3002_s7 + $0x10] sm:$0xff]  ;;  %s1992_s2 = sshll.u32 %s3325_s23, 2  ;;  %s3110_s23 = sshll.u32 %s630_s13, 4  ;;  %s1360_s23 = int_to_ptr.vmem [resolvable:$true] %s3110_s23 }
 0x124   : > { %1028 = vmatpush.bf16.msra.mxu2 %v1966_v58  ;;  %v1972_v3 = vld [vmem:[%s3002_s7 + $0x60] sm:$0xff]  ;;  %v1971_v7 = vld [vmem:[%s3002_s7 + $0x58] sm:$0xff]  ;;  %v1970_v11 = vld [vmem:[%s3002_s7 + $0x50] sm:$0xff]  ;;  %s1337_s3 = sadd.s32 %s3326_s22, %s1992_s2  ;;  %s3118_s2 = sshll.u32 %s637_s8, 4  ;;  %s1379_s2 = int_to_ptr.vmem [resolvable:$true] %s3118_s2 }
 0x125   : > { %1042 = vmatpush.bf16.msra.mxu3 %v1974_v59  ;;  %v1945_v12 = vld [vmem:[%s2994_s29 + $0x8] sm:$0xff]  ;;  %v1944_v16 = vld [vmem:[%s2994_s29] sm:$0xff]  ;;  %v1935_v19 = vld [vmem:[#allocation2 + $0x4] sm:$0xf0]  ;;  %s1923_s12 = sshll.u32 %s1337_s3, 2 }
 0x126   : > { %873 = vmatpush.bf16.msra.mxu0 %v1949_v60  ;;  %v1953_v13 = vld [vmem:[%s2994_s29 + $0x48] sm:$0xff]  ;;  %v1952_v17 = vld [vmem:[%s2994_s29 + $0x40] sm:$0xff]  ;;  %v1934_v20 = vld [vmem:[#allocation2 + $0x4] sm:$0xf]  ;;  %s1339_s18 = scalar_lea.hbm %s3327_s28, %s1923_s12  ;;  %s3329_s4 = smov %s3328_s26 }
 0x127   : > { %887 = vmatpush.bf16.msra.mxu1 %v1957_v61  ;;  %v1961_v14 = vld [vmem:[%s3002_s7 + $0x8] sm:$0xff]  ;;  %v1690_v21 = vld [vmem:[#allocation2 + $0x8] sm:$0xf0]  ;;  %v1960_v22 = vld [vmem:[%s3002_s7] sm:$0xff]  ;;  %s1358_s21 = scalar_lea.hbm %s3328_s26, %s1923_s12  ;;  %s3099_s29 = sshll.u32 %s623_s27, 4  ;;  %s1341_s29 = int_to_ptr.vmem [resolvable:$true] %s3099_s29 }
 0x128   : > { %1029 = vmatpush.bf16.msra.mxu2 %v1965_v62  ;;  %v1969_v15 = vld [vmem:[%s3002_s7 + $0x48] sm:$0xff]  ;;  %v1968_v23 = vld [vmem:[%s3002_s7 + $0x40] sm:$0xff]  ;;  %v1943_v24 = vld [vmem:[#allocation13 + $0x38] sm:$0xff]  ;;  %v3055_v26 = vor.u32 %v1934_v20, %v1690_v21  ;;  %s3101_s11 = sshll.u32 %s1339_s18, 4  ;;  %s3112_s22 = sshll.u32 %s1358_s21, 4  ;;  %s1343_s11 = int_to_ptr.hbm [resolvable:$true] %s3101_s11  ;;  %s1362_s22 = int_to_ptr.hbm [resolvable:$true] %s3112_s22 }
 0x129   : > { %1043 = vmatpush.bf16.msra.mxu3 %v1973_v63  ;;  %v1688_v18 = vld [vmem:[#allocation2] sm:$0xf]  ;;  %v1983_v27 = vld [vmem:[%s3004_s9 + $0x38] sm:$0xff]  ;;  %v1940_v35 = vld [vmem:[#allocation13 + $0x20] sm:$0xff]  ;;  %s2461_s5 = sshra.s32 %s1343_s11, 4  ;;  %s2462_s5 = int_to_ptr.hbm [resolvable:$true] %s2461_s5 }
 0x12a   : > { %874 = vmatpush.bf16.msra.mxu0 %v1948_v0  ;;  %v3053_v25 = vor.u32 %v1935_v19, %v1688_v18  ;;  %v1991_v28 = vld [vmem:[%s3004_s9 + $0x78] sm:$0xff]  ;;  %v1942_v29 = vld [vmem:[#allocation13 + $0x30] sm:$0xff]  ;;  %v1941_v32 = vld [vmem:[#allocation13 + $0x28] sm:$0xff]  ;;  %s2463_s10 = scalar_lea.hbm %s2462_s5, 8  ;;  %p2468_p5 = scmp.lt.s32.totalorder %s2462_s5, %s3327_s28 }
 0x12b   : > { %888 = vmatpush.bf16.msra.mxu1 %v1956_v1  ;;  %v1982_v30 = vld [vmem:[%s3004_s9 + $0x30] sm:$0xff]  ;;  %v1981_v33 = vld [vmem:[%s3004_s9 + $0x28] sm:$0xff]  ;;  %v1939_v36 = vld [vmem:[#allocation13 + $0x18] sm:$0xff]  ;;  %p2464_p0 = scmp.ne.s32.totalorder %s2462_s5, %s2463_s10 }
 0x12c   : > { %1030 = vmatpush.bf16.msra.mxu2 %v1964_v2  ;;  %v1990_v31 = vld [vmem:[%s3004_s9 + $0x70] sm:$0xff]  ;;  %v1989_v34 = vld [vmem:[%s3004_s9 + $0x68] sm:$0xff]  ;;  %v1980_v37 = vld [vmem:[%s3004_s9 + $0x20] sm:$0xff] }
 0x12d   : > { %1044 = vmatpush.bf16.msra.mxu3 %v1972_v3  ;;  %v1988_v38 = vld [vmem:[%s3004_s9 + $0x60] sm:$0xff]  ;;  %v1938_v39 = vld [vmem:[#allocation13 + $0x10] sm:$0xff]  ;;  %v1979_v40 = vld [vmem:[%s3004_s9 + $0x18] sm:$0xff]  ;;  %p2465_p3 = pnand %p2464_p0, %p2926_p10 }
 0x12e   : > { %875 = vmatpush.bf16.msra.mxu0 %v1947_v4  ;;  %v1987_v41 = vld [vmem:[%s3004_s9 + $0x58] sm:$0xff]  ;;  %v1937_v42 = vld [vmem:[#allocation13 + $0x8] sm:$0xff]  ;;  %v1978_v43 = vld [vmem:[%s3004_s9 + $0x10] sm:$0xff] }
 0x12f   : > { %889 = vmatpush.bf16.msra.mxu1 %v1955_v5  ;;  %v1986_v44 = vld [vmem:[%s3004_s9 + $0x50] sm:$0xff]  ;;  %v1936_v45 = vld [vmem:[#allocation13] sm:$0xff]  ;;  %v1977_v46 = vld [vmem:[%s3004_s9 + $0x8] sm:$0xff]  ;;  %p2466_p4 = pneg %p2465_p3 }
 0x130   : > { %1031 = vmatpush.bf16.msra.mxu2 %v1963_v6  ;;  %v1985_v47 = vld [vmem:[%s3004_s9 + $0x48] sm:$0xff]  ;;  %v1976_v48 = vld [vmem:[%s3004_s9] sm:$0xff] }
 0x131   : > { %1045 = vmatpush.bf16.msra.mxu3 %v1971_v7  ;;  %v1984_v49 = vld [vmem:[%s3004_s9 + $0x40] sm:$0xff] }
 0x132   : > { %876 = vmatpush.bf16.msra.mxu0 %v1946_v8  ;;  %v715_v8 = vld [vmem:[%s560_s16] sm:$0xff] }
 0x133   : > { %890 = vmatpush.bf16.msra.mxu1 %v1954_v9  ;;  %v713_v9 = vld [vmem:[%s550_s6] sm:$0xff] }
 0x134   : > { %1032 = vmatpush.bf16.msra.mxu2 %v1962_v10 }
 0x135   : > { %1046 = vmatpush.bf16.msra.mxu3 %v1970_v11  ;;  %v714_v11 = vld [vmem:[%s550_s6 + $0x8] sm:$0xff]  ;;  %s3330_s6 = sld [smem:[#allocation50_spill]] }
 0x136   : > { %877 = vmatpush.bf16.msra.mxu0 %v1945_v12  ;;  %v716_v12 = vld [vmem:[%s560_s16 + $0x8] sm:$0xff] }
 0x137   : > { %891 = vmatpush.bf16.msra.mxu1 %v1953_v13 }
 0x138   : > { %1033 = vmatpush.bf16.msra.mxu2 %v1961_v14 }
 0x139   : > { %1047 = vmatpush.bf16.msra.mxu3 %v1969_v15 }
 0x13a   : > { %878 = vmatpush.bf16.msra.mxu0 %v1944_v16 }
 0x13b   : > { %892 = vmatpush.bf16.msra.mxu1 %v1952_v17  ;;  %s1377_s16 = scalar_lea.hbm %s3330_s6, %s1923_s12  ;;  %s1316_s12 = scalar_lea.sflag [#allocation5], %s621_s0 }
 0x13c   : > { %1034 = vmatpush.bf16.msra.mxu2 %v1960_v22  ;;  %s3120_s3 = sshll.u32 %s1377_s16, 4  ;;  %s1381_s3 = int_to_ptr.hbm [resolvable:$true] %s3120_s3 }
 0x13d   : > { %1048 = vmatpush.bf16.msra.mxu3 %v1968_v23  ;;  %879 = vmatmul.bf16.vlgmr.msra.gmra.mxu0 %v3053_v25 }
 0x13e   : > { %893 = vmatmul.bf16.vlgmr.msra.gmra.mxu1 %v3055_v26  ;;  %1183 = vmatpush.bf16.msrb.mxu0 %v1983_v27 }
 0x13f   : > { %1035 = vmatmul.bf16.vlgmr.msra.gmra.mxu2 %v3053_v25  ;;  %1197 = vmatpush.bf16.msrb.mxu1 %v1991_v28 }
 0x140   : > { %1260 = vmatpush.bf16.msrb.mxu2 %v1943_v24  ;;  %1049 = vmatmul.bf16.vlgmr.msra.gmra.mxu3 %v3055_v26 }
 0x141   : > { %1287 = vmatpush.bf16.msrb.mxu3 %v1943_v24 }
 0x142   : > { %1184 = vmatpush.bf16.msrb.mxu0 %v1982_v30 }
 0x143   : > { %1198 = vmatpush.bf16.msrb.mxu1 %v1990_v31 }
 0x144   : > { %1261 = vmatpush.bf16.msrb.mxu2 %v1942_v29 }
 0x145   : > { %1288 = vmatpush.bf16.msrb.mxu3 %v1942_v29 }
 0x146   : > { %1185 = vmatpush.bf16.msrb.mxu0 %v1981_v33 }
 0x147   : > { %1199 = vmatpush.bf16.msrb.mxu1 %v1989_v34 }
 0x148   : > { %1262 = vmatpush.bf16.msrb.mxu2 %v1941_v32 }
 0x149   : > { %1289 = vmatpush.bf16.msrb.mxu3 %v1941_v32 }
 0x14a   : > { %1186 = vmatpush.bf16.msrb.mxu0 %v1980_v37 }
 0x14b   : > { %1200 = vmatpush.bf16.msrb.mxu1 %v1988_v38 }
 0x14c   : > { %1263 = vmatpush.bf16.msrb.mxu2 %v1940_v35 }
 0x14d   : > { %1290 = vmatpush.bf16.msrb.mxu3 %v1940_v35 }
 0x14e   : > { %1187 = vmatpush.bf16.msrb.mxu0 %v1979_v40 }
 0x14f   : > { %1201 = vmatpush.bf16.msrb.mxu1 %v1987_v41 }
 0x150   : > { %1264 = vmatpush.bf16.msrb.mxu2 %v1939_v36 }
 0x151   : > { %1291 = vmatpush.bf16.msrb.mxu3 %v1939_v36 }
 0x152   : > { %1188 = vmatpush.bf16.msrb.mxu0 %v1978_v43 }
 0x153   : > { %1202 = vmatpush.bf16.msrb.mxu1 %v1986_v44 }
 0x154   : > { %1265 = vmatpush.bf16.msrb.mxu2 %v1938_v39 }
 0x155   : > { %1292 = vmatpush.bf16.msrb.mxu3 %v1938_v39 }
 0x156   : > { %1189 = vmatpush.bf16.msrb.mxu0 %v1977_v46 }
 0x157   : > { %1203 = vmatpush.bf16.msrb.mxu1 %v1985_v47 }
 0x158   : > { %1266 = vmatpush.bf16.msrb.mxu2 %v1937_v42 }
 0x159   : > { %1293 = vmatpush.bf16.msrb.mxu3 %v1937_v42 }
 0x15a   : > { %1190 = vmatpush.bf16.msrb.mxu0 %v1976_v48 }
 0x15b   : > { %1204 = vmatpush.bf16.msrb.mxu1 %v1984_v49 }
 0x15c   : > { %1267 = vmatpush.bf16.msrb.mxu2 %v1936_v45 }
 0x15d   : > { %1294 = vmatpush.bf16.msrb.mxu3 %v1936_v45  ;;  %1191 = vmatmul.bf16.vlgmr.msrb.gmra.mxu0 %v3053_v25 }
 0x15e   : > { %1205 = vmatmul.bf16.vlgmr.msrb.gmra.mxu1 %v3055_v26 }
 0x1ba   : > { %v880_v50 = vpop.f32.mrf.mxu0 }
 0x1bb   : > { %v894_v51 = vpop.f32.mrf.mxu1 }
 0x1bc   : > { %v895_v56 = vadd.f32 %v894_v51, %v880_v50 }
 0x1be   : > { %v1274_v13 = vmul.f32 %v895_v56, %v713_v9 }
 0x1c2   : > { %v1036_v52 = vpop.f32.mrf.mxu2  ;;  %v882_v54 = vpop.f32.mrf.mxu0 }
 0x1c3   : > { %v1050_v53 = vpop.f32.mrf.mxu3  ;;  %v896_v55 = vpop.f32.mrf.mxu1 }
 0x1c4   : > { %v897_v57 = vadd.f32 %v896_v55, %v882_v54  ;;  %v1051_v61 = vadd.f32 %v1050_v53, %v1036_v52 }
 0x1c6   : > { %v1211_v58 = vpack.c.bf16 %v897_v57, %v895_v56  ;;  %v1275_v16 = vmul.f32 %v897_v57, %v714_v11  ;;  %v1301_v25 = vmul.f32 %v1051_v61, %v713_v9 }
 0x1c8   : > { %1268 = vmatmul.bf16.vlgmr.msrb.gmra.mxu2 %v1211_v58 }
 0x1ca   : > { %v1038_v59 = vpop.f32.mrf.mxu2 }
 0x1cb   : > { %v1052_v60 = vpop.f32.mrf.mxu3 }
 0x1cc   : > { %v1053_v62 = vadd.f32 %v1052_v60, %v1038_v59 }
 0x1ce   : > { %v1286_v63 = vpack.c.bf16 %v1053_v62, %v1051_v61  ;;  %v1302_v26 = vmul.f32 %v1053_v62, %v714_v11 }
 0x1d0   : > { %1295 = vmatmul.bf16.vlgmr.msrb.gmra.mxu3 %v1286_v63 }
 0x1da   : > { %v1192_v0 = vpop.f32.mrf.mxu0 }
 0x1db   : > { %v1206_v1 = vpop.f32.mrf.mxu1 }
 0x1dc   : > { %v1207_v2 = vadd.f32 %v1206_v1, %v1192_v0 }
 0x1e2   : > { %v1194_v3 = vpop.f32.mrf.mxu0 }
 0x1e3   : > { %v1208_v4 = vpop.f32.mrf.mxu1 }
 0x1e4   : > { %v1209_v5 = vadd.f32 %v1208_v4, %v1194_v3 }
 0x1e6   : > { %v2008_v6 = vpack.c.bf16 %v1209_v5, %v1207_v2 }
 0x1e8   : > { %2009 = vst [vmem:[%s637_s8] sm:$0xff] %v2008_v6  }
 0x24b   : > { %v1269_v7 = vpop.f32.mrf.mxu2 }
 0x24c   : > { %v1276_v10 = vmul.f32 %v1269_v7, %v715_v8 }
 0x24e   : > { %v1278_v17 = vadd.f32 %v1276_v10, %v1274_v13 }
 0x250   : > { %v1280_v20 = vmul.f32 0.125, %v1278_v17 }
 0x253   : > { %v1296_v14 = vpop.f32.mrf.mxu3  ;;  %v1271_v15 = vpop.f32.mrf.mxu2 }
 0x254   : > { %v1277_v18 = vmul.f32 %v1271_v15, %v716_v12  ;;  %v1303_v22 = vmul.f32 %v1296_v14, %v715_v8 }
 0x256   : > { %v1279_v19 = vadd.f32 %v1277_v18, %v1275_v16  ;;  %v1305_v28 = vadd.f32 %v1303_v22, %v1301_v25 }
 0x258   : > { %v1281_v21 = vmul.f32 0.125, %v1279_v19 }
 0x25a   : > { %v1998_v23 = vpack.c.bf16 %v1281_v21, %v1280_v20 }
 0x25b   : > { %v1298_v24 = vpop.f32.mrf.mxu3 }
 0x25c   : > { %v1304_v27 = vmul.f32 %v1298_v24, %v716_v12  ;;  %1999 = vst [vmem:[%s623_s27] sm:$0xff] %v1998_v23   ;;  %s2467_s27 = scalar_lea.hbm %s3327_s28, 32 }
 0x25d   : > { %p2469_p6 = scmp.lt.s32.totalorder %s2467_s27, %s2463_s10 }
 0x25e   : > { %v1306_v29 = vadd.f32 %v1304_v27, %v1302_v26 }
 0x25f   : > { %p2470_p7 = por %p2469_p6, %p2468_p5 }
 0x261   : > { %p2471_p8 = pnand %p2470_p7, %p2466_p4 }
 0x263   : > { %2474 = shalt.err (!%p2471_p8)
}
 0x264   : > { %s2675_s0 = smov 64   ;;  %s2676_s26 = smov 128   ;;  %v2003_v30 = vpack.c.bf16 %v1306_v29, %v1305_v28 }
 0x265   : > { %s2677_s21 = smov 4   ;;  %s3151_s7 = scalar_lea.sflag [#allocation16], %s501_s15 }
 0x266   : > { %2030 = dma.vmem_to_hbm [thread:$0]  (%p2926_p10), %s1341_s29, 128, %s1343_s11, %s1316_s12, %s2675_s0, %s2676_s26, %s2677_s21  }
 0x267   : > { %2004 = vst [vmem:[%s630_s13] sm:$0xff] %v2003_v30   ;;  %s2489_s9 = sshra.s32 %s1362_s22, 4  ;;  %s2495_s29 = scalar_lea.hbm %s3329_s4, 32  ;;  %s2490_s9 = int_to_ptr.hbm [resolvable:$true] %s2489_s9 }
 0x268   : > { %s2491_s16 = scalar_lea.hbm %s2490_s9, 8  ;;  %p2496_p2 = scmp.lt.s32.totalorder %s2490_s9, %s3329_s4 }
 0x269   : > { %p2492_p11 = scmp.ne.s32.totalorder %s2490_s9, %s2491_s16  ;;  %p2497_p12 = scmp.lt.s32.totalorder %s2495_s29, %s2491_s16 }
 0x26b   : > { %p2493_p1 = pnand %p2492_p11, %p2926_p10  ;;  %p2498_p0 = por %p2497_p12, %p2496_p2 }
 0x26d   : > { %p2494_p9 = pneg %p2493_p1 }
 0x26f   : > { %p2499_p3 = pnand %p2498_p0, %p2494_p9 }
 0x271   : > { %2502 = shalt.err (!%p2499_p3)
}
 0x272   : > { %2031 = dma.vmem_to_hbm [thread:$0]  (%p2926_p10), %s1360_s23, 128, %s1362_s22, %s3151_s7, %s2675_s0, %s2676_s26, %s2677_s21  }
 0x273   : > { %s2517_s30 = sshra.s32 %s1381_s3, 4  ;;  %s2523_s18 = scalar_lea.hbm %s3330_s6, 32  ;;  %s2518_s30 = int_to_ptr.hbm [resolvable:$true] %s2517_s30 }
 0x274   : > { %s2519_s15 = scalar_lea.hbm %s2518_s30, 8  ;;  %p2524_p7 = scmp.lt.s32.totalorder %s2518_s30, %s3330_s6 }
 0x275   : > { %p2520_p4 = scmp.ne.s32.totalorder %s2518_s30, %s2519_s15  ;;  %p2525_p8 = scmp.lt.s32.totalorder %s2523_s18, %s2519_s15 }
 0x277   : > { %p2521_p5 = pnand %p2520_p4, %p2926_p10  ;;  %p2526_p11 = por %p2525_p8, %p2524_p7 }
 0x279   : > { %p2522_p6 = pneg %p2521_p5 }
 0x27b   : > { %p2527_p1 = pnand %p2526_p11, %p2522_p6 }
 0x27d   : > { %2530 = shalt.err (!%p2527_p1)
}
 0x27e   : > { %2032 = dma.vmem_to_hbm [thread:$0]  (%p2926_p10), %s1379_s2, 128, %s1381_s3, %s3151_s7, %s2675_s0, %s2676_s26, %s2677_s21  }
 0x27f PF: > { %s3332_s23 = sld [smem:[#allocation32_spill]] }
 0x280   : > { %s3333_s22 = sld [smem:[#allocation24_spill]] }
 0x285   : > { %p2077_p9 = scmp.ge.s32.totalorder %s3332_s23, 2 }
 0x286   : > { %s1395_s25 = sand.u32 1, %s3333_s22  }
 0x287   : > { %p2063_p2 = pnand %p2077_p9, %p2931_p13  ;;  %s1396_s9 = scalar_lea.sflag [#allocation5], %s1395_s25 }
 0x289   : > { %p2064_p12 = pneg %p2063_p2 }
 0x28b   : > { %2604 = dma.done.wait (%p2064_p12), %s1396_s9, 128  }
 0x28c   : > { %2606 = vsyncadd (%p2064_p12), %s1396_s9, 4294967168  ;;  %s3335_s1 = sadd.s32 4294967294, %s3332_s23  }
 0x28d   : > { %s1405_s16 = sand.u32 1, %s3335_s1  }
 0x28e   : > { %s1406_s5 = scalar_lea.sflag [#allocation16], %s1405_s16 }
 0x28f   : > { %2608 = dma.done.wait (%p2064_p12), %s1406_s5, 256  }
 0x290   : > { %2610 = vsyncadd (%p2064_p12), %s1406_s5, 4294967040  ;;  %s31_s26 = sadd.s32 1, %s3332_s23   ;;  %s3337_s3 = sld [smem:[#allocation25_spill]] }
 0x291   : > { %p3194_p10 = scmp.ge.s32.totalorder %s31_s26, 6   ;;  %s3338_s15 = sld [smem:[#allocation37_spill]] }
 0x292   : > { %s3339_s0 = sld [smem:[#allocation26_spill]]  ;;  %s3347_s13 = smov %s2617_s14 }
 0x293   : > { %s3340_s18 = sld [smem:[#allocation35_spill]]  ;;  %s3349_s16 = smov %s2629_s17 }
 0x294   : > { %s3341_s21 = sld [smem:[#allocation27_spill]]  ;;  %s3351_s19 = smov %s2641_s20 }
 0x295   : > { %s3342_s7 = sld [smem:[#allocation36_spill]] }
 0x296   : > { %s3343_s22 = sld [smem:[#allocation30_spill]]  ;;  %s3348_s14 = smov %s3337_s3 }
 0x297   : > { %s3344_s23 = sld [smem:[#allocation31_spill]]  ;;  %30 = sbr.rel (!%p3194_p10) target bundleno = 25 (0x19), region = 196 }
 0x298   : > { %s3345_s24 = sld [smem:[#allocation33_spill]]  ;;  %s3350_s17 = smov %s3339_s0 }
 0x299   : > { %s3346_s25 = sld [smem:[#allocation34_spill]] }
 0x29a   : > { %s3352_s20 = smov %s3341_s21 }
 0x29b   : > { %s3353_s21 = smov %s3342_s7 }
 0x29c   :  { %1422 = vsyncpa [#allocation4], 1 }
 0x29d   :  { %1424 = vsyncpa [#allocation4 + $0x1], 1 }
 0x29e   :  { %1425 = vsyncpa [#allocation7], 1 }
 0x29f   :  { %1426 = vsyncpa [#allocation5], 1 }
 0x2a0   :  { %1428 = vsyncpa [#allocation5 + $0x1], 1 }
 0x2a1   :  { %1429 = vsyncpa [#allocation16], 1 }
 0x2a2   :  { %1431 = vsyncpa [#allocation16 + $0x1], 1 }

</bundles_post_ra>
